<compile_context>
chip_gen: v7x
topology: tpu7x:2x2x1
jax: 0.10.0
libtpu: 0.0.40
codegen_flags: <defaults>
</compile_context>

<pallas_src>
import functools
import math

import jax
import jax.numpy as jnp
from jax.experimental import pallas as pl
from jax.experimental.pallas import tpu as pltpu


_GELU_C = math.sqrt(2.0 / math.pi)


# ---------------------------------------------------------------------------
# tiling / compiler-param helpers
# ---------------------------------------------------------------------------

def _pick_tile(dim, target, align):
    """Largest tile <= target that is a multiple of `align` and divides `dim`;
    falls back to the full dim (always a legal Pallas TPU block)."""
    if dim <= target:
        return dim
    t = (target // align) * align
    while t >= align:
        if dim % t == 0:
            return t
        t -= align
    return dim


def _query_vmem_cap():
    # Leave ~25% headroom for compiler scratch / double buffering.  On v7x the
    # physical VMEM is 64 MiB per TensorCore, so never request all of it.
    cap = 64 * 1024 * 1024
    try:
        info = pltpu.get_tpu_info()
        cap = int(getattr(info, "vmem_capacity_bytes", cap))
    except Exception:
        pass
    return (cap * 3) // 4


_VMEM_CAP = _query_vmem_cap()


def _compiler_params(dimension_semantics, vmem_bytes_estimate):
    kwargs = dict(dimension_semantics=dimension_semantics)
    # Only raise the scoped-VMEM limit when the tiles actually need it
    # (defaults: 16 MiB v5e / 32 MiB v6e,v7x).  Cap well below physical VMEM.
    if vmem_bytes_estimate > 8 * 1024 * 1024:
        kwargs["vmem_limit_bytes"] = int(min(vmem_bytes_estimate, _VMEM_CAP))
    return pltpu.CompilerParams(**kwargs)


# ---------------------------------------------------------------------------
# Pallas kernels
# ---------------------------------------------------------------------------

def _ln_matmul_kernel(x_ref, g_ref, bln_ref, w_ref, b_ref, o_ref, xn_ref,
                      *, eps, activation):
    # LayerNorm prologue in f32, computed ONCE per row block (first N tile only)
    # and cached in the xn VMEM scratch so subsequent N tiles reuse it.
    @pl.when(pl.program_id(1) == 0)
    def _():
        x = x_ref[...].astype(jnp.float32)
        mean = jnp.mean(x, axis=-1, keepdims=True)
        xc = x - mean
        var = jnp.mean(xc * xc, axis=-1, keepdims=True)
        xn = xc * jax.lax.rsqrt(var + eps)
        xn = xn * g_ref[...] + bln_ref[...]
        xn_ref[...] = xn.astype(xn_ref.dtype)

    # bf16 operands on the MXU, f32 accumulation.
    h = jnp.dot(xn_ref[...], w_ref[...], preferred_element_type=jnp.float32)
    h = h + b_ref[...]
    if activation == "gelu_new":
        # GPT-2 "gelu_new": 0.5*x*(1+tanh(sqrt(2/pi)*(x+0.044715*x^3)))
        h = 0.5 * h * (1.0 + jnp.tanh(_GELU_C * (h + 0.044715 * (h * h * h))))
    o_ref[...] = h.astype(o_ref.dtype)


def fused_ln_matmul(x2d, gamma, beta, w, b, *, eps, activation=None):
    """y = act(LayerNorm(x) @ W + b) with Conv1D semantics (W: (in, out))."""
    M, K = x2d.shape
    N = w.shape[1]
    tm = _pick_tile(M, 256, 16)
    w_bytes = K * N * w.dtype.itemsize
    # (a) If the whole weight slab fits comfortably in VMEM (GPT-2 c_attn/c_fc
    #     at D<=1024 always do), keep it resident across all row blocks: the
    #     N grid collapses to 1 so LN runs once and W is never re-streamed.
    # (b) Otherwise tile N; the xn scratch still limits LN to once per row block.
    if w_bytes <= 6 * 1024 * 1024:
        tn = N
    else:
        tn = _pick_tile(N, 512, 128)
    grid = (M // tm, N // tn)
    isz = x2d.dtype.itemsize
    est = (2 * (tm * K * isz + K * tn * w.dtype.itemsize + 2 * K * 4 + tn * 4)
           + 2 * tm * tn * isz + tm * K * w.dtype.itemsize
           + tm * tn * 4 + (1 << 20))
    return pl.pallas_call(
        functools.partial(_ln_matmul_kernel, eps=eps, activation=activation),
        out_shape=jax.ShapeDtypeStruct((M, N), x2d.dtype),
        grid=grid,
        in_specs=[
            pl.BlockSpec((tm, K), lambda i, j: (i, 0)),
            pl.BlockSpec((1, K), lambda i, j: (0, 0)),
            pl.BlockSpec((1, K), lambda i, j: (0, 0)),
            pl.BlockSpec((K, tn), lambda i, j: (0, j)),
            pl.BlockSpec((1, tn), lambda i, j: (0, j)),
        ],
        out_specs=pl.BlockSpec((tm, tn), lambda i, j: (i, j)),
        scratch_shapes=[pltpu.VMEM((tm, K), w.dtype)],
        compiler_params=_compiler_params(("parallel", "arbitrary"), est),
    )(x2d,
      gamma.reshape(1, K).astype(jnp.float32),
      beta.reshape(1, K).astype(jnp.float32),
      w,
      b.reshape(1, N).astype(jnp.float32))


def _matmul_res_kernel(x_ref, w_ref, b_ref, res_ref, o_ref, acc_ref):
    k = pl.program_id(2)

    @pl.when(k == 0)
    def _():
        acc_ref[...] = jnp.zeros_like(acc_ref)

    acc_ref[...] += jnp.dot(x_ref[...], w_ref[...],
                            preferred_element_type=jnp.float32)

    @pl.when(k == pl.num_programs(2) - 1)
    def _():
        h = acc_ref[...] + b_ref[...] + res_ref[...].astype(jnp.float32)
        o_ref[...] = h.astype(o_ref.dtype)


def matmul_bias_residual(x2d, w, b, residual):
    """y = x @ W + b + residual, K-tiled with an f32 VMEM accumulator."""
    M, K = x2d.shape
    N = w.shape[1]
    tm = _pick_tile(M, 256, 16)
    tn = _pick_tile(N, 512, 128)
    tk = _pick_tile(K, 1024, 128)   # deep K tiles -> fewer grid steps / acc branches
    grid = (M // tm, N // tn, K // tk)
    isz = x2d.dtype.itemsize
    est = (2 * (tm * tk * isz + tk * tn * w.dtype.itemsize + tn * 4 + tm * tn * isz)
           + 2 * tm * tn * isz + tm * tn * 4 + (1 << 20))
    return pl.pallas_call(
        _matmul_res_kernel,
        out_shape=jax.ShapeDtypeStruct((M, N), x2d.dtype),
        grid=grid,
        in_specs=[
            pl.BlockSpec((tm, tk), lambda i, j, k: (i, k)),
            pl.BlockSpec((tk, tn), lambda i, j, k: (k, j)),
            pl.BlockSpec((1, tn), lambda i, j, k: (0, j)),
            pl.BlockSpec((tm, tn), lambda i, j, k: (i, j)),
        ],
        out_specs=pl.BlockSpec((tm, tn), lambda i, j, k: (i, j)),
        scratch_shapes=[pltpu.VMEM((tm, tn), jnp.float32)],
        compiler_params=_compiler_params(
            ("parallel", "parallel", "arbitrary"), est),
    )(x2d, w, b.reshape(1, N).astype(jnp.float32), residual)


def _layernorm_kernel(x_ref, g_ref, b_ref, o_ref, *, eps):
    x = x_ref[...].astype(jnp.float32)
    mean = jnp.mean(x, axis=-1, keepdims=True)
    xc = x - mean
    var = jnp.mean(xc * xc, axis=-1, keepdims=True)
    y = xc * jax.lax.rsqrt(var + eps)
    o_ref[...] = (y * g_ref[...] + b_ref[...]).astype(o_ref.dtype)


def layernorm(x2d, gamma, beta, eps, out_dtype=None):
    M, D = x2d.shape
    out_dtype = out_dtype or x2d.dtype
    tm = _pick_tile(M, 1024, 16)
    grid = (M // tm,)
    est = (2 * (tm * D * x2d.dtype.itemsize + 2 * D * 4)
           + 2 * tm * D * jnp.dtype(out_dtype).itemsize + (1 << 20))
    return pl.pallas_call(
        functools.partial(_layernorm_kernel, eps=eps),
        out_shape=jax.ShapeDtypeStruct((M, D), out_dtype),
        grid=grid,
        in_specs=[
            pl.BlockSpec((tm, D), lambda i: (i, 0)),
            pl.BlockSpec((1, D), lambda i: (0, 0)),
            pl.BlockSpec((1, D), lambda i: (0, 0)),
        ],
        out_specs=pl.BlockSpec((tm, D), lambda i: (i, 0)),
        compiler_params=_compiler_params(("parallel",), est),
    )(x2d,
      gamma.reshape(1, D).astype(jnp.float32),
      beta.reshape(1, D).astype(jnp.float32))


def _attention_kernel(q_ref, kv_ref, o_ref, *, n_head, d_head, scale, t_q):
    # q_ref : (1, Tq, 3D) bf16 (query rows of the QKV slab, this query tile)
    # kv_ref: (1, T,  3D) bf16 (full sequence, resident across query tiles)
    # o_ref : (1, Tq, D)  bf16
    T = kv_ref.shape[1]
    D = n_head * d_head
    row0 = pl.program_id(1) * t_q
    row = row0 + jax.lax.broadcasted_iota(jnp.int32, (t_q, T), 0)
    col = jax.lax.broadcasted_iota(jnp.int32, (t_q, T), 1)
    causal = col <= row

    # Heads handled with static in-kernel slices (no HBM head transposes).
    # TODO(synk): for d_head=64 process heads in 128-lane pairs, and for long T
    # switch to a flash-style KV-tiled online-softmax loop instead of the full
    # (Tq, T) score matrix (matters most on v7x's 64 MiB VMEM).
    outs = []
    for h in range(n_head):
        lo = h * d_head
        q = q_ref[0, :, lo:lo + d_head]                        # bf16 (Tq, Dh)
        k = kv_ref[0, :, D + lo:D + lo + d_head]               # bf16 (T,  Dh)
        v = kv_ref[0, :, 2 * D + lo:2 * D + lo + d_head]       # bf16 (T,  Dh)
        # Contract k's last dim directly -> no k.T materialization on the XLU.
        s = jax.lax.dot_general(q, k, (((1,), (1,)), ((), ())),
                                preferred_element_type=jnp.float32)
        s = s * scale                                          # scale f32 scores
        s = jnp.where(causal, s, -1e30)
        s = s - jnp.max(s, axis=-1, keepdims=True)
        p = jnp.exp(s)
        # approx reciprocal is an EUP op (free slot); fine for bf16 outputs.
        p = p * pl.reciprocal(jnp.sum(p, axis=-1, keepdims=True), approx=True)
        outs.append(jnp.dot(p.astype(v.dtype), v,
                            preferred_element_type=jnp.float32))
    # Single full-width lane-dense store of all heads.
    o_ref[0] = jnp.concatenate(outs, axis=-1).astype(o_ref.dtype)


def causal_attention(qkv, n_head):
    """qkv: (B, T, 3D) bf16 straight from the c_attn kernel; returns (B, T, D)."""
    B, T, threeD = qkv.shape
    D = threeD // 3
    d_head = D // n_head
    scale = 1.0 / math.sqrt(d_head)
    t_q = _pick_tile(T, 256, 8)          # query-tile grid axis -> real pipelining
    grid = (B, T // t_q)
    isz = qkv.dtype.itemsize
    est = (2 * (t_q * threeD * isz + T * threeD * isz) + 2 * t_q * D * isz
           + (n_head + 2) * t_q * T * 4 + t_q * D * 4 + (1 << 20))
    return pl.pallas_call(
        functools.partial(_attention_kernel, n_head=n_head,
                          d_head=d_head, scale=scale, t_q=t_q),
        out_shape=jax.ShapeDtypeStruct((B, T, D), qkv.dtype),
        grid=grid,
        in_specs=[
            pl.BlockSpec((1, t_q, threeD), lambda b, qt: (b, qt, 0)),  # q rows
            pl.BlockSpec((1, T, threeD), lambda b, qt: (b, 0, 0)),     # k/v (resident)
        ],
        out_specs=pl.BlockSpec((1, t_q, D), lambda b, qt: (b, qt, 0)),
        compiler_params=_compiler_params(("parallel", "parallel"), est),
    )(qkv, qkv)


# ---------------------------------------------------------------------------
# GPT-2 transformer block (HF GPT2Block semantics, eval mode => dropout = id)
# ---------------------------------------------------------------------------

def gpt2_block(x, p, n_head, eps):
    B, T, D = x.shape
    x2 = x.reshape(B * T, D)

    # ln_1 + c_attn (QKV) fused; LN computed once per row block, W resident.
    qkv = fused_ln_matmul(x2, p["ln1_g"], p["ln1_b"],
                          p["attn_w"], p["attn_b"], eps=eps)      # (B*T, 3D)
    # causal attention, lane-dense single-store output per query tile.
    a = causal_attention(qkv.reshape(B, T, 3 * D), n_head)        # (B, T, D)
    # attn c_proj + bias + residual fused, K-tiled f32 accumulator.
    x2 = matmul_bias_residual(a.reshape(B * T, D),
                              p["attn_proj_w"], p["attn_proj_b"], x2)
    # ln_2 + c_fc + gelu_new fused.
    ff = fused_ln_matmul(x2, p["ln2_g"], p["ln2_b"],
                         p["fc_w"], p["fc_b"], eps=eps, activation="gelu_new")
    # mlp c_proj + bias + residual fused, deep-K tiles.
    x2 = matmul_bias_residual(ff, p["mlp_proj_w"], p["mlp_proj_b"], x2)

    return x2.reshape(B, T, D)


# ---------------------------------------------------------------------------
# GraphGPT2Model forward (DAG of shared GPT-2 blocks)
# ---------------------------------------------------------------------------

def graph_gpt2_forward(params, input_ids, *, edges, topo_order, node_to_block,
                       edge_weights, n_head, eps, use_residual=True):
    B, T = input_ids.shape
    compute_dtype = jnp.bfloat16

    # embeddings (gather is glue, not the hot path)
    tok = jnp.take(params["wte"], input_ids, axis=0)              # (B, T, D)
    pos = jnp.take(params["wpe"], jnp.arange(T, dtype=jnp.int32), axis=0)[None]
    hidden = (tok + pos).astype(compute_dtype)                    # dropout: identity (eval)

    preds = {n: [u for (u, v) in edges if v == n] for n in topo_order}

    node_outputs = {}
    for node in topo_order:
        ps = preds[node]
        if ps:
            if len(ps) == 1:
                combined = node_outputs[ps[0]]
            else:
                w = edge_weights[node]
                sw = jax.nn.softmax(w.astype(jnp.float32), axis=0)
                stacked = jnp.stack([node_outputs[pr] for pr in ps]).astype(jnp.float32)
                combined = jnp.sum(sw[:, None, None, None] * stacked,
                                   axis=0).astype(compute_dtype)
        else:
            combined = hidden

        blk = params["blocks"][node_to_block[node]]
        block_out = gpt2_block(combined, blk, n_head, eps)
        if use_residual:
            block_out = combined + block_out
        node_outputs[node] = block_out

    # graph_type='custom': sum over nodes with out-degree 0
    sources = {u for (u, _) in edges}
    out_nodes = [n for n in topo_order if n not in sources]
    if out_nodes:
        final = node_outputs[out_nodes[0]]
        for n in out_nodes[1:]:
            final = final + node_outputs[n]
    else:
        final = node_outputs[topo_order[-1]]

    Bf, Tf, D = final.shape
    # ln_f is memory-bound: keep the writeback in bf16 (the compute dtype).
    final = layernorm(final.reshape(Bf * Tf, D),
                      params["ln_f_g"], params["ln_f_b"], eps,
                      out_dtype=compute_dtype).reshape(Bf, Tf, D)
    return final


# ---------------------------------------------------------------------------
# Deterministic parameter init (synthetic, mirrors module __init__ shapes)
# ---------------------------------------------------------------------------

def init_block_params(key, D):
    k = jax.random.split(key, 4)
    f32, bf16 = jnp.float32, jnp.bfloat16
    return dict(
        ln1_g=jnp.ones((D,), f32), ln1_b=jnp.zeros((D,), f32),
        attn_w=(0.02 * jax.random.normal(k[0], (D, 3 * D), f32)).astype(bf16),
        attn_b=jnp.zeros((3 * D,), f32),
        attn_proj_w=(0.02 * jax.random.normal(k[1], (D, D), f32)).astype(bf16),
        attn_proj_b=jnp.zeros((D,), f32),
        ln2_g=jnp.ones((D,), f32), ln2_b=jnp.zeros((D,), f32),
        fc_w=(0.02 * jax.random.normal(k[2], (D, 4 * D), f32)).astype(bf16),
        fc_b=jnp.zeros((4 * D,), f32),
        mlp_proj_w=(0.02 * jax.random.normal(k[3], (4 * D, D), f32)).astype(bf16),
        mlp_proj_b=jnp.zeros((D,), f32),
    )


if __name__ == "__main__":
    # config (GPT2Config-like, small)
    vocab_size, n_positions, n_embd, n_head, n_layer = 50, 16, 32, 4, 2
    eps = 1e-5
    B, T = 2, 8
    n_nodes = 4

    # Deterministic DAG standing in for generate_graph(..., 'custom'):
    # chain 0->1->2->3 plus scale-free-style extra forward edges.
    # TODO(synk): nx.scale_free_graph extra edges are nondeterministic; replaced
    # with a fixed deterministic edge set of the same structural form.
    edges = [(0, 1), (1, 2), (2, 3), (0, 2), (1, 3)]
    topo_order = [0, 1, 2, 3]
    # layer_sharing=True: first n_layer nodes map to blocks 0..n_layer-1,
    # remaining nodes map to a (here: deterministic) block index.
    node_to_block = {0: 0, 1: 1, 2: 0, 3: 1}

    key = jax.random.PRNGKey(0)
    k_wte, k_wpe, k_blk, k_edge, k_ids = jax.random.split(key, 5)

    params = dict(
        wte=0.02 * jax.random.normal(k_wte, (vocab_size, n_embd), jnp.float32),
        wpe=0.01 * jax.random.normal(k_wpe, (n_positions, n_embd), jnp.float32),
        blocks=[init_block_params(kk, n_embd)
                for kk in jax.random.split(k_blk, n_layer)],
        ln_f_g=jnp.ones((n_embd,), jnp.float32),
        ln_f_b=jnp.zeros((n_embd,), jnp.float32),
    )

    # edge weights for nodes with >1 predecessor (torch.randn(len(preds)))
    preds = {n: [u for (u, v) in edges if v == n] for n in topo_order}
    edge_weights = {}
    ekeys = jax.random.split(k_edge, n_nodes)
    for n in topo_order:
        if len(preds[n]) > 1:
            edge_weights[n] = jax.random.normal(ekeys[n], (len(preds[n]),),
                                                jnp.float32)

    input_ids = jax.random.randint(k_ids, (B, T), 0, vocab_size, dtype=jnp.int32)

    out = graph_gpt2_forward(
        params, input_ids,
        edges=edges, topo_order=topo_order, node_to_block=node_to_block,
        edge_weights=edge_weights, n_head=n_head, eps=eps, use_residual=True)
    jax.block_until_ready(out)

    assert out.shape == (B, T, n_embd)
    assert bool(jnp.all(jnp.isfinite(out.astype(jnp.float32))))
    print("KERNEL_OK")
</pallas_src>

<mosaic_0001>
module attributes {stable_mosaic.version = 11 : i64} {
  func.func @_ln_matmul_kernel(%arg0: i32, %arg1: i32, %arg2: memref<16x32xbf16, #tpu.memory_space<vmem>>, %arg3: memref<1x32xf32, #tpu.memory_space<vmem>>, %arg4: memref<1x32xf32, #tpu.memory_space<vmem>>, %arg5: memref<32x96xbf16, #tpu.memory_space<vmem>>, %arg6: memref<1x96xf32, #tpu.memory_space<vmem>>, %arg7: memref<16x96xbf16, #tpu.memory_space<vmem>>, %arg8: memref<16x32xbf16, #tpu.memory_space<vmem>>) attributes {dimension_semantics = [#tpu.dimension_semantics<parallel>, #tpu.dimension_semantics<arbitrary>], iteration_bounds = array<i64: 1, 1>, scalar_prefetch = 0 : i64, scratch_operands = 1 : i64, tpu.core_type = #tpu.core_type<tc>, window_params = [{transform_indices = @transform_0, window_bounds = array<i64: 16, 32>}, {pipeline_mode = #tpu.pipeline_mode<synchronous>, transform_indices = @transform_1, window_bounds = array<i64: 1, 32>}, {pipeline_mode = #tpu.pipeline_mode<synchronous>, transform_indices = @transform_2, window_bounds = array<i64: 1, 32>}, {transform_indices = @transform_3, window_bounds = array<i64: 32, 96>}, {transform_indices = @transform_4, window_bounds = array<i64: 1, 96>}, {transform_indices = @transform_5, window_bounds = array<i64: 16, 96>}]} {
    %c0_i32 = arith.constant 0 : i32
    %0 = arith.cmpi eq, %arg1, %c0_i32 : i32
    %1 = arith.extui %0 : i1 to i32
    %c0_i32_0 = arith.constant 0 : i32
    %2 = arith.cmpi ne, %1, %c0_i32_0 : i32
    scf.if %2 {
      %c0_8 = arith.constant 0 : index
      %c0_9 = arith.constant 0 : index
      %11 = vector.load %arg2[%c0_8, %c0_9] : memref<16x32xbf16, #tpu.memory_space<vmem>>, vector<16x32xbf16>
      %12 = arith.extf %11 : vector<16x32xbf16> to vector<16x32xf32>
      %cst_10 = arith.constant dense<0.000000e+00> : vector<16xf32>
      %13 = vector.multi_reduction <add>, %12, %cst_10 [1] : vector<16x32xf32> to vector<16xf32>
      %14 = vector.shape_cast %13 : vector<16xf32> to vector<16x1xf32>
      %cst_11 = arith.constant 3.200000e+01 : f32
      %15 = vector.broadcast %cst_11 : f32 to vector<16x1xf32>
      %16 = arith.divf %14, %15 : vector<16x1xf32>
      %17 = vector.broadcast %16 : vector<16x1xf32> to vector<16x32xf32>
      %18 = arith.subf %12, %17 : vector<16x32xf32>
      %19 = arith.mulf %18, %18 : vector<16x32xf32>
      %cst_12 = arith.constant dense<0.000000e+00> : vector<16xf32>
      %20 = vector.multi_reduction <add>, %19, %cst_12 [1] : vector<16x32xf32> to vector<16xf32>
      %21 = vector.shape_cast %20 : vector<16xf32> to vector<16x1xf32>
      %cst_13 = arith.constant 3.200000e+01 : f32
      %22 = vector.broadcast %cst_13 : f32 to vector<16x1xf32>
      %23 = arith.divf %21, %22 : vector<16x1xf32>
      %cst_14 = arith.constant 9.99999974E-6 : f32
      %24 = vector.broadcast %cst_14 : f32 to vector<16x1xf32>
      %25 = arith.addf %23, %24 : vector<16x1xf32>
      %26 = math.rsqrt %25 : vector<16x1xf32>
      %27 = vector.broadcast %26 : vector<16x1xf32> to vector<16x32xf32>
      %28 = arith.mulf %18, %27 : vector<16x32xf32>
      %c0_15 = arith.constant 0 : index
      %c0_16 = arith.constant 0 : index
      %29 = vector.load %arg3[%c0_15, %c0_16] : memref<1x32xf32, #tpu.memory_space<vmem>>, vector<1x32xf32>
      %30 = vector.broadcast %29 : vector<1x32xf32> to vector<16x32xf32>
      %31 = arith.mulf %28, %30 : vector<16x32xf32>
      %c0_17 = arith.constant 0 : index
      %c0_18 = arith.constant 0 : index
      %32 = vector.load %arg4[%c0_17, %c0_18] : memref<1x32xf32, #tpu.memory_space<vmem>>, vector<1x32xf32>
      %33 = vector.broadcast %32 : vector<1x32xf32> to vector<16x32xf32>
      %34 = arith.addf %31, %33 : vector<16x32xf32>
      %35 = arith.truncf %34 : vector<16x32xf32> to vector<16x32xbf16>
      %c0_19 = arith.constant 0 : index
      %c0_20 = arith.constant 0 : index
      %36 = vector.load %arg8[%c0_19, %c0_20] : memref<16x32xbf16, #tpu.memory_space<vmem>>, vector<16x32xbf16>
      tpu.vector_store %arg8[%c0_19, %c0_20], %35 {strides = array<i32>} : memref<16x32xbf16, #tpu.memory_space<vmem>>, vector<16x32xbf16>,
    } else {
    }
    %c0 = arith.constant 0 : index
    %c0_1 = arith.constant 0 : index
    %3 = vector.load %arg8[%c0, %c0_1] : memref<16x32xbf16, #tpu.memory_space<vmem>>, vector<16x32xbf16>
    %c0_2 = arith.constant 0 : index
    %c0_3 = arith.constant 0 : index
    %4 = vector.load %arg5[%c0_2, %c0_3] : memref<32x96xbf16, #tpu.memory_space<vmem>>, vector<32x96xbf16>
    %cst = arith.constant dense<0.000000e+00> : vector<16x96xf32>
    %5 = tpu.matmul %3, %4, %cst {dimension_numbers = #tpu.dot_dimension_numbers<[1], [0], [0], [1], [0, 0, 1, 1], [], []>} : vector<16x32xbf16>, vector<32x96xbf16>, vector<16x96xf32> -> vector<16x96xf32>
    %c0_4 = arith.constant 0 : index
    %c0_5 = arith.constant 0 : index
    %6 = vector.load %arg6[%c0_4, %c0_5] : memref<1x96xf32, #tpu.memory_space<vmem>>, vector<1x96xf32>
    %7 = vector.broadcast %6 : vector<1x96xf32> to vector<16x96xf32>
    %8 = arith.addf %5, %7 : vector<16x96xf32>
    %9 = arith.truncf %8 : vector<16x96xf32> to vector<16x96xbf16>
    %c0_6 = arith.constant 0 : index
    %c0_7 = arith.constant 0 : index
    %10 = vector.load %arg7[%c0_6, %c0_7] : memref<16x96xbf16, #tpu.memory_space<vmem>>, vector<16x96xbf16>
    tpu.vector_store %arg7[%c0_6, %c0_7], %9 {strides = array<i32>} : memref<16x96xbf16, #tpu.memory_space<vmem>>, vector<16x96xbf16>,
    return
  }
  func.func @transform_0(%arg0: i32, %arg1: i32) -> (i32, i32) {
    %c0_i32 = arith.constant 0 : i32
    %c0_i32_0 = arith.constant 0 : i32
    return %arg0, %c0_i32 : i32, i32
  }
  func.func @transform_1(%arg0: i32, %arg1: i32) -> (i32, i32) {
    %c0_i32 = arith.constant 0 : i32
    %c0_i32_0 = arith.constant 0 : i32
    %c0_i32_1 = arith.constant 0 : i32
    return %c0_i32, %c0_i32_0 : i32, i32
  }
  func.func @transform_2(%arg0: i32, %arg1: i32) -> (i32, i32) {
    %c0_i32 = arith.constant 0 : i32
    %c0_i32_0 = arith.constant 0 : i32
    %c0_i32_1 = arith.constant 0 : i32
    return %c0_i32, %c0_i32_0 : i32, i32
  }
  func.func @transform_3(%arg0: i32, %arg1: i32) -> (i32, i32) {
    %c0_i32 = arith.constant 0 : i32
    %c0_i32_0 = arith.constant 0 : i32
    return %c0_i32, %arg1 : i32, i32
  }
  func.func @transform_4(%arg0: i32, %arg1: i32) -> (i32, i32) {
    %c0_i32 = arith.constant 0 : i32
    %c0_i32_0 = arith.constant 0 : i32
    return %c0_i32, %arg1 : i32, i32
  }
  func.func @transform_5(%arg0: i32, %arg1: i32) -> (i32, i32) {
    %c0_i32 = arith.constant 0 : i32
    return %arg0, %arg1 : i32, i32
  }
}

</mosaic_0001>

<bundles_post_ra>
// kernel: tpu_custom_call.1
= control target key start
LH: loop header
LB: loop body
LE: loop exit
PB: predicated region body
PF: predicated region fallthrough
CT: control target
= control target key end

     0   :  { %10 = vsyncpa [#allocation4], 0  ;;  %s411_s0 = inlined_call_operand.hbm [shape: bf16[16,32], index: 0, kind: input, shape index: {}]   ;;  %s412_s1 = inlined_call_operand.vmem [shape: f32[1,32], index: 1, kind: input, shape index: {}]   ;;  %s413_s2 = inlined_call_operand.vmem [shape: f32[1,32], index: 2, kind: input, shape index: {}]   ;;  %s414_s3 = inlined_call_operand.hbm [shape: bf16[32,96], index: 3, kind: input, shape index: {}]   ;;  %s415_s4 = inlined_call_operand.vmem [shape: f32[1,96], index: 4, kind: input, shape index: {}]   ;;  %s416_s5 = inlined_call_operand.hbm [shape: bf16[16,96], index: 5, kind: output, shape index: {}]  }
   0x1   :  { %11 = vsyncpa [#allocation7], 0 }
   0x2   :  { %12 = vsyncpa [#allocation5], 0  ;;  %s314_s18 = smov [#allocation3]   ;;  %s242_s22 = scalar_lea.hbm %s411_s0, 128 }
   0x3   :  { %s18_s19 = sshll.u32 %s314_s18, 4  ;;  %p243_p0 = scmp.ne.s32.totalorder %s411_s0, %s242_s22  ;;  %s19_s19 = int_to_ptr.vmem [resolvable:$true] %s18_s19 }
   0x4   :  { %p246_p1 = scmp.lt.u32.totalorder %s242_s22, %s411_s0 }
   0x6   :  { %p248_p2 = pnand %p246_p1, %p243_p0 }
   0x8   :  { %251 = shalt.err (!%p248_p2)
}
   0x9   :  { %s252_s27 = scalar_lea.vmem %s19_s19, 128  ;;  %p257_p4 = scmp.lt.s32.totalorder %s19_s19, %s19_s19 }
   0xa   :  { %p253_p3 = scmp.ne.s32.totalorder %s19_s19, %s252_s27  ;;  %p258_p5 = scmp.lt.s32.totalorder %s252_s27, %s252_s27 }
   0xc   :  { %p259_p6 = por %p258_p5, %p257_p4 }
   0xe   :  { %p260_p7 = pnand %p259_p6, %p253_p3 }
  0x10   :  { %263 = shalt.err (!%p260_p7)
}
  0x11   :  { %s315_s28 = smov 64   ;;  %s316_s29 = smov 4  }
  0x12   :  { %24 = dma.hbm_to_vmem [thread:$0]  %s411_s0, 128, %s19_s19, [#allocation4], %s315_s28, %s315_s28, %s316_s29  }
  0x13   :  { %s317_s7 = smov [#allocation6]   ;;  %s264_s11 = scalar_lea.hbm %s414_s3, 256 }
  0x14   :  { %s34_s8 = sshll.u32 %s317_s7, 4  ;;  %p265_p8 = scmp.ne.s32.totalorder %s414_s3, %s264_s11  ;;  %s35_s8 = int_to_ptr.vmem [resolvable:$true] %s34_s8 }
  0x15   :  { %p268_p9 = scmp.lt.u32.totalorder %s264_s11, %s414_s3 }
  0x17   :  { %p270_p10 = pnand %p268_p9, %p265_p8 }
  0x19   :  { %273 = shalt.err (!%p270_p10)
}
  0x1a   :  { %s274_s16 = scalar_lea.vmem %s35_s8, 256  ;;  %p279_p12 = scmp.lt.s32.totalorder %s35_s8, %s35_s8 }
  0x1b   :  { %p275_p11 = scmp.ne.s32.totalorder %s35_s8, %s274_s16  ;;  %p280_p13 = scmp.lt.s32.totalorder %s274_s16, %s274_s16 }
  0x1d   :  { %p281_p0 = por %p280_p13, %p279_p12 }
  0x1f   :  { %p282_p1 = pnand %p281_p0, %p275_p11 }
  0x21   :  { %285 = shalt.err (!%p282_p1)
}
  0x22   :  { %40 = dma.hbm_to_vmem [thread:$0]  %s414_s3, 256, %s35_s8, [#allocation7], %s315_s28, %s315_s28, %s316_s29  }
  0x23   :  { %308 = dma.done.wait [#allocation4], 128  }
  0x24   :  { %309 = vsyncadd [#allocation4], 4294967168 }
  0x25   :  { %310 = dma.done.wait [#allocation7], 256  }
  0x26   :  { %311 = vsyncadd [#allocation7], 4294967040  ;;  %v215_v0 = vld [vmem:[#allocation3] sm:$0xff]   ;;  %vm58_vm0 = vcmask 261120   ;;  %v236_v15 = vld [vmem:[#allocation6] sm:$0xff]   ;;  %v318_v16 = vmov 0.0  }
  0x27   :  { %v216_v1 = vunpack.c.l.bf16 %v215_v0  ;;  %v217_v2 = vunpack.c.h.bf16 %v215_v0  ;;  %221 = vmatprep.subr.bf16.mxu0 %v318_v16  ;;  %v237_v17 = vld [vmem:[#allocation6 + $0x8] sm:$0xff]   ;;  %vm319_vm1 = vmmov 0   ;;  %v204_v26 = vld [vmem:[%s412_s1] ss:$0 sm:$0xff]  ;;  %vm183_vm2 = vcmask 781312   ;;  %s320_s1 = smov [#allocation8]  }
  0x28   :  { %222 = vmatpush3.bf16.msra.mxu0 %v236_v15  ;;  %225 = vmatprep.mubr.msk.bf16.mxu0 %vm319_vm1, %v318_v16  ;;  %v205_v30 = vld [vmem:[%s413_s2] ss:$0 sm:$0xff]  ;;  %s191_s2 = sshll.u32 %s320_s1, 4  ;;  %s192_s2 = int_to_ptr.vmem [resolvable:$true] %s191_s2 }
  0x29   :  { %v59_v3 = vsel %vm58_vm0, %v216_v1, 0.0  ;;  %v62_v4 = vsel %vm58_vm0, %v217_v2, 0.0  ;;  %223 = vmatprep.subr.bf16.mxu0 %v318_v16  ;;  %v206_v36 = vld [vmem:[%s415_s4] ss:$0 sm:$0xff]  ;;  %s286_s23 = scalar_lea.vmem %s192_s2, 128  ;;  %p291_p3 = scmp.lt.s32.totalorder %s192_s2, %s192_s2 }
  0x2a   :  { %60 = vadd.xlane.f32.xlu0 %v59_v3  ;;  %p287_p2 = scmp.ne.s32.totalorder %s192_s2, %s286_s23  ;;  %p292_p4 = scmp.lt.s32.totalorder %s286_s23, %s286_s23 }
  0x2c   :  { %224 = vmatpush3.bf16.msra.mxu0 %v237_v17  ;;  %p293_p5 = por %p292_p4, %p291_p3 }
  0x2e   :  { %63 = vadd.xlane.f32.xlu0 %v62_v4  ;;  %p294_p6 = pnand %p293_p5, %p287_p2 }
  0xb7   :  { %v61_v5 = vpop.xlane.xlu0 %60 }
  0xb8   :  { %v66_v6 = vmul.f32 0.03125, %v61_v5 }
  0xba   :  { %v68_v7 = vsub.f32 %v216_v1, %v66_v6 }
  0xbb   :  { %v64_v8 = vpop.xlane.xlu0 %63 }
  0xbc   :  { %v67_v9 = vmul.f32 0.03125, %v64_v8  ;;  %v70_v10 = vmul.f32 %v68_v7, %v68_v7 }
  0xbe   :  { %v69_v11 = vsub.f32 %v217_v2, %v67_v9  ;;  %v72_v12 = vsel %vm58_vm0, %v70_v10, 0.0 }
  0xbf   :  { %73 = vadd.xlane.f32.xlu1 %v72_v12 }
  0xc0   :  { %v71_v13 = vmul.f32 %v69_v11, %v69_v11 }
  0xc2   :  { %v75_v14 = vsel %vm58_vm0, %v71_v13, 0.0 }
  0xc3   :  { %76 = vadd.xlane.f32.xlu1 %v75_v14 }
 0x14c   :  { %v74_v18 = vpop.xlane.xlu1 %73 }
 0x14d   :  { %v78_v19 = vmul.f32 0.03125, %v74_v18 }
 0x14f   :  { %v80_v20 = vadd.f32 1e-05, %v78_v19 }
 0x150   :  { %v77_v21 = vpop.xlane.xlu1 %76 }
 0x151   :  { %238 = vrsqrt.f32 %v80_v20  ;;  %v79_v22 = vmul.f32 0.03125, %v77_v21 }
 0x153   :  { %v81_v23 = vadd.f32 1e-05, %v79_v22 }
 0x155   :  { %240 = vrsqrt.f32 %v81_v23 }
 0x15b   :  { %v239_v24 = vpop.eup %238 }
 0x15c   :  { %v84_v25 = vmul.f32 %v239_v24, %v68_v7 }
 0x15e   :  { %v93_v28 = vmul.f32 %v204_v26, %v84_v25 }
 0x15f   :  { %v241_v27 = vpop.eup %240 }
 0x160   :  { %v85_v29 = vmul.f32 %v241_v27, %v69_v11  ;;  %v102_v32 = vadd.f32 %v205_v30, %v93_v28 }
 0x162   :  { %v94_v31 = vmul.f32 %v204_v26, %v85_v29 }
 0x164   :  { %v103_v33 = vadd.f32 %v205_v30, %v94_v31 }
 0x166   :  { %v104_v34 = vpack.c.bf16 %v103_v33, %v102_v32 }
 0x168   :  { %105 = vst.msk [vmem:[#allocation2] sm:$0xff] %vm58_vm0, %v104_v34 }
 0x16f   :  { %v106_v35 = vld [vmem:[#allocation2] sm:$0xff] }
 0x170   :  { %226 = vmatmul.mubr.msk.bf16.vlgmr.msra.gmra.mrb[0].mxu0 %vm58_vm0, %v106_v35 }
 0x243   :  { %v168_v37 = vpop.f32.mrb[0].mxu0 }
 0x244   :  { %v169_v38 = vadd.f32 %v206_v36, %v168_v37  ;;  %v227_v39 = vpop.f32.mrb[1].mxu0 }
 0x245   :  { %v171_v40 = vpop.f32.mrb[2].mxu0 }
 0x246   :  { %v212_v41 = vpack.c.bf16 %v169_v38, %v169_v38  ;;  %v172_v42 = vadd.f32 %v206_v36, %v171_v40  ;;  %v228_v43 = vpop.f32.mrb[3].mxu0 }
 0x248   :  { %v213_v44 = vpack.c.bf16 %v172_v42, %v172_v42  ;;  %184 = vst.msk [vmem:[#allocation8] sm:$0xf] %vm183_vm2, %v212_v41 }
 0x24a   :  { %185 = vst.msk [vmem:[#allocation8 + $0x4] sm:$0xf] %vm183_vm2, %v213_v44 }
 0x24b   :  { %297 = shalt.err (!%p294_p6)
}
 0x24c   :  { %s298_s25 = scalar_lea.hbm %s416_s5, 128 }
 0x24d   :  { %p299_p7 = scmp.ne.s32.totalorder %s416_s5, %s298_s25  ;;  %p302_p8 = scmp.lt.u32.totalorder %s298_s25, %s416_s5 }
 0x24f   :  { %p304_p9 = pnand %p302_p8, %p299_p7 }
 0x251   :  { %307 = shalt.err (!%p304_p9)
}
 0x252   :  { %197 = dma.vmem_to_hbm [thread:$0]  %s192_s2, 128, %s416_s5, [#allocation5], %s315_s28, %s315_s28, %s316_s29  }
 0x253   :  { %312 = dma.done.wait [#allocation5], 128  }
 0x254   :  { %313 = vsyncadd [#allocation5], 4294967168 }
 0x255   :  { %201 = vsyncpa [#allocation4], 1 }
 0x256   :  { %202 = vsyncpa [#allocation7], 1 }
 0x257   :  { %203 = vsyncpa [#allocation5], 1 }

</bundles_post_ra>
